<compile_context>
chip_gen: v6e
topology: v6e:2x2x1
jax: 0.10.0
libtpu: 0.0.40
codegen_flags: <defaults>
</compile_context>

<pallas_src>
import functools

import jax
import jax.numpy as jnp
from jax.experimental import pallas as pl
from jax.experimental.pallas import tpu as pltpu


def _normalize_kernel(x_ref, o_ref, *, power):
    x = x_ref[...]
    xf = x.astype(jnp.float32)
    if power == 2:
        s = jnp.sum(xf * xf, axis=-1, keepdims=True)      # XLU lane-reduce, f32 accum
        inv = jax.lax.rsqrt(s)                             # EUP rsqrt; inf on zero rows (matches x/0)
    else:
        s = jnp.sum(xf ** power, axis=-1, keepdims=True)
        inv = s ** (-1.0 / power)
    # Scale in f32 and cast once at the store (no inv->bf16 double rounding).
    o_ref[...] = (xf * inv).astype(o_ref.dtype)


def _ceil_div(a, b):
    return -(-a // b)


def _round_up(v, q):
    return _ceil_div(v, q) * q


def _sublane_quantum(itemsize):
    # Rows per packed vreg along sublanes: 8 for 32-bit, 16 for 16-bit, 32 for 8-bit.
    return 8 * max(1, 4 // int(itemsize))


def _hw_budget():
    """Generation-aware tiling budget.

    Returns (target_block_bytes, max_total_vmem_for_4_blocks, num_tensorcores,
    vmem_capacity_bytes)."""
    vmem_capacity = 64 << 20  # conservative default = v7x-sized VMEM
    try:
        info = pltpu.get_tpu_info()
        vmem_capacity = int(getattr(info, "vmem_capacity_bytes", vmem_capacity))
    except Exception:
        pass  # query unavailable (e.g. interpret mode) -> stay conservative
    if vmem_capacity > (96 << 20):
        # v5e / v6e class: 128 MiB VMEM, one TensorCore per chip.
        # Bigger blocks are free VMEM-wise and cut per-step overhead / lengthen DMAs.
        return 16 << 20, 64 << 20, 1, vmem_capacity
    # v7x class: 64 MiB VMEM, two TensorCores, 3.2 TB/s HBM.
    return 8 << 20, 36 << 20, 2, vmem_capacity


def _choose_tile_n(N, row_bytes, quantum, budget):
    target_block_bytes, max_total_vmem, num_cores, _ = budget

    # Biggest block that hits the per-generation target while keeping
    # in+out double-buffered (4 blocks) inside the VMEM budget.
    cap_from_vmem = max(1, max_total_vmem // (4 * row_bytes))
    tile = min(target_block_bytes // max(1, row_bytes), cap_from_vmem)
    tile = max(quantum, (tile // quantum) * quantum)

    if tile >= N:
        # Whole array fits in one block.  On a 2-TensorCore part, split a
        # reasonably sized problem in two so both cores get work; never on
        # single-TC parts (grid steps are a serial loop there).
        if num_cores > 1 and N >= 2 * quantum and N * row_bytes >= (4 << 20):
            tile = min(N, _round_up(_ceil_div(N, 2), quantum))
        else:
            tile = N
    # No min-steps shrinking beyond this: tile < N already yields >=2 grid
    # steps (all a 2-TC chip needs); shrinking below the target block size
    # only multiplies per-step overhead.
    return tile


def normalize(x, *, power=2, tile_n=None):
    """Row-wise Lp normalization of a [N, D] array (PyTorch `Normalize` module)."""
    # TODO(synk): support rank>2 inputs (reduce over dim 1, broadcast over trailing dims).
    if x.ndim != 2:
        raise ValueError("normalize expects a [N, D] array (flattened features)")

    N, D = x.shape
    itemsize = jnp.dtype(x.dtype).itemsize
    quantum = _sublane_quantum(itemsize)
    budget = _hw_budget()

    # Keep the output lane-dense: zero-pad D up to a multiple of 128 (zeros do
    # not change the Lp sum), slice the padding off afterwards.
    D_pad = _round_up(D, 128)
    x_in = x if D_pad == D else jnp.pad(x, ((0, 0), (0, D_pad - D)))
    row_bytes = D_pad * itemsize

    if tile_n is None:
        tile_n = _choose_tile_n(N, row_bytes, quantum, budget)
    else:
        tile_n = max(quantum, _round_up(int(tile_n), quantum))
    tile_n = min(tile_n, N)

    grid = (pl.cdiv(N, tile_n),)

    block_bytes = tile_n * row_bytes
    vmem_capacity = budget[3]
    # in + out blocks, each double-buffered, plus headroom; declared honestly
    # (no hard clamp), never above physical VMEM.
    vmem_limit = int(min(vmem_capacity, max(32 << 20, 4 * block_bytes + (4 << 20))))

    kernel = functools.partial(_normalize_kernel, power=power)

    out = pl.pallas_call(
        kernel,
        out_shape=jax.ShapeDtypeStruct((N, D_pad), x.dtype),
        grid=grid,
        in_specs=[pl.BlockSpec((tile_n, D_pad), lambda i: (i, 0))],
        out_specs=pl.BlockSpec((tile_n, D_pad), lambda i: (i, 0)),
        compiler_params=pltpu.CompilerParams(
            dimension_semantics=("parallel",),
            vmem_limit_bytes=vmem_limit,
        ),
    )(x_in)

    if D_pad != D:
        out = out[:, :D]
    return out


if __name__ == "__main__":
    key = jax.random.PRNGKey(0)
    k0, k1, k2, k3 = jax.random.split(key, 4)

    # Lane-dense feature dim (like flattened ResNet features), f32.
    N, D = 16, 256
    x = jax.random.normal(k0, (N, D), dtype=jnp.float32)
    out = jax.block_until_ready(normalize(x))
    ref = x / jnp.sqrt(jnp.sum(x * x, axis=1, keepdims=True))
    assert out.shape == x.shape and out.dtype == x.dtype
    assert jnp.allclose(out, ref, atol=1e-5, rtol=1e-5), "mismatch vs reference"

    # Remainder path (N not divisible by tile) with a forced small tile.
    x2 = jax.random.normal(k1, (20, 128), dtype=jnp.float32)
    out2 = jax.block_until_ready(normalize(x2, tile_n=8))
    ref2 = x2 / jnp.sqrt(jnp.sum(x2 * x2, axis=1, keepdims=True))
    assert jnp.allclose(out2, ref2, atol=1e-5, rtol=1e-5), "mismatch (remainder path)"

    # bf16 path: reduction + scale in f32, single cast at the end.
    x3 = jax.random.normal(k2, (N, D), dtype=jnp.bfloat16)
    out3 = jax.block_until_ready(normalize(x3))
    x3f = x3.astype(jnp.float32)
    ref3 = x3f / jnp.sqrt(jnp.sum(x3f * x3f, axis=1, keepdims=True))
    assert out3.dtype == jnp.bfloat16
    assert jnp.allclose(out3.astype(jnp.float32), ref3, atol=2e-2, rtol=2e-2), "mismatch (bf16)"

    # Non-lane-dense D (padded to 128 inside the wrapper, then sliced).
    x4 = jax.random.normal(k3, (16, 100), dtype=jnp.float32)
    out4 = jax.block_until_ready(normalize(x4))
    ref4 = x4 / jnp.sqrt(jnp.sum(x4 * x4, axis=1, keepdims=True))
    assert out4.shape == x4.shape
    assert jnp.allclose(out4, ref4, atol=1e-5, rtol=1e-5), "mismatch (padded-D path)"

    print("KERNEL_OK")
</pallas_src>

<mosaic_0001>
module attributes {stable_mosaic.version = 11 : i64} {
  func.func @_normalize_kernel(%arg0: i32, %arg1: memref<16x256xf32, #tpu.memory_space<vmem>>, %arg2: memref<16x256xf32, #tpu.memory_space<vmem>>) attributes {dimension_semantics = [#tpu.dimension_semantics<parallel>], iteration_bounds = array<i64: 1>, scalar_prefetch = 0 : i64, scratch_operands = 0 : i64, tpu.core_type = #tpu.core_type<tc>, window_params = [{transform_indices = @transform_0, window_bounds = array<i64: 16, 256>}, {transform_indices = @transform_1, window_bounds = array<i64: 16, 256>}]} {
    %c0 = arith.constant 0 : index
    %c0_0 = arith.constant 0 : index
    %0 = vector.load %arg1[%c0, %c0_0] : memref<16x256xf32, #tpu.memory_space<vmem>>, vector<16x256xf32>
    %1 = arith.mulf %0, %0 : vector<16x256xf32>
    %cst = arith.constant dense<0.000000e+00> : vector<16xf32>
    %2 = vector.multi_reduction <add>, %1, %cst [1] : vector<16x256xf32> to vector<16xf32>
    %3 = vector.shape_cast %2 : vector<16xf32> to vector<16x1xf32>
    %4 = math.rsqrt %3 : vector<16x1xf32>
    %5 = vector.broadcast %4 : vector<16x1xf32> to vector<16x256xf32>
    %6 = arith.mulf %0, %5 : vector<16x256xf32>
    %c0_1 = arith.constant 0 : index
    %c0_2 = arith.constant 0 : index
    %7 = vector.load %arg2[%c0_1, %c0_2] : memref<16x256xf32, #tpu.memory_space<vmem>>, vector<16x256xf32>
    tpu.vector_store %arg2[%c0_1, %c0_2], %6 {strides = array<i32>} : memref<16x256xf32, #tpu.memory_space<vmem>>, vector<16x256xf32>,
    return
  }
  func.func @transform_0(%arg0: i32) -> (i32, i32) {
    %c0_i32 = arith.constant 0 : i32
    %c0_i32_0 = arith.constant 0 : i32
    return %arg0, %c0_i32 : i32, i32
  }
  func.func @transform_1(%arg0: i32) -> (i32, i32) {
    %c0_i32 = arith.constant 0 : i32
    %c0_i32_0 = arith.constant 0 : i32
    return %arg0, %c0_i32 : i32, i32
  }
}

</mosaic_0001>

<bundles_post_ra>
// kernel: tpu_custom_call.1
= control target key start
LH: loop header
LB: loop body
LE: loop exit
PB: predicated region body
PF: predicated region fallthrough
CT: control target
= control target key end

     0   :  { %6 = vsyncpa [#allocation3], 0  ;;  %s142_s0 = inlined_call_operand.hbm [shape: f32[16,256], index: 0, kind: input, shape index: {}]   ;;  %s143_s1 = inlined_call_operand.hbm [shape: f32[16,256], index: 1, kind: output, shape index: {}]  }
   0x1   :  { %7 = vsyncpa [#allocation4], 0  ;;  %s116_s6 = smov [#allocation2]  }
   0x2   :  { %s13_s7 = sshll.u32 %s116_s6, 4  ;;  %s14_s7 = int_to_ptr.vmem [resolvable:$true] %s13_s7 }
   0x3   :  { %s80_s8 = scalar_lea.vmem %s14_s7, 512  ;;  %p85_p1 = scmp.lt.s32.totalorder %s14_s7, %s14_s7 }
   0x4   :  { %p81_p0 = scmp.ne.s32.totalorder %s14_s7, %s80_s8  ;;  %p86_p2 = scmp.lt.s32.totalorder %s80_s8, %s80_s8 }
   0x6   :  { %p87_p3 = por %p86_p2, %p85_p1 }
   0x8   :  { %p88_p4 = pnand %p87_p3, %p81_p0 }
   0xa   :  { %91 = shalt.err (!%p88_p4)
}
   0xb   :  { %s117_s9 = smov 256   ;;  %s118_s10 = smov 16  }
   0xc   :  { %19 = dma.hbm_to_vmem [thread:$0]  %s142_s0, 512, %s14_s7, [#allocation3], %s117_s9, %s117_s9, %s118_s10  }
   0xd   :  { %112 = dma.done.wait [#allocation3], 512  }
   0xe   :  { %113 = vsyncadd [#allocation3], 4294966784  ;;  %v23_v0 = vld [vmem:[#allocation2] sm:$0xff]  ;;  %v24_v1 = vld [vmem:[#allocation2 + $0x8] sm:$0xff]  ;;  %s119_s0 = smov [#allocation5]  }
   0xf   :  { %v25_v2 = vld [vmem:[#allocation2 + $0x10] sm:$0xff]  ;;  %v27_v3 = vmul.f32 %v23_v0, %v23_v0  ;;  %v28_v4 = vmul.f32 %v24_v1, %v24_v1  ;;  %v26_v5 = vld [vmem:[#allocation2 + $0x18] sm:$0xff]  ;;  %s52_s13 = sshll.u32 %s119_s0, 4  ;;  %s53_s13 = int_to_ptr.vmem [resolvable:$true] %s52_s13 }
  0x10   :  { %v29_v6 = vmul.f32 %v25_v2, %v25_v2  ;;  %v30_v7 = vmul.f32 %v26_v5, %v26_v5  ;;  %s92_s14 = scalar_lea.vmem %s53_s13, 512  ;;  %p97_p6 = scmp.lt.s32.totalorder %s53_s13, %s53_s13 }
  0x11   :  { %v31_v8 = vadd.f32 %v28_v4, %v27_v3  ;;  %p93_p5 = scmp.ne.s32.totalorder %s53_s13, %s92_s14  ;;  %p98_p7 = scmp.lt.s32.totalorder %s92_s14, %s92_s14 }
  0x12   :  { %v34_v9 = vadd.f32 %v30_v7, %v29_v6 }
  0x13   :  { %32 = vadd.xlane.f32.xlu0 %v31_v8  ;;  %p99_p8 = por %p98_p7, %p97_p6 }
  0x15   :  { %p100_p9 = pnand %p99_p8, %p93_p5 }
  0x17   :  { %35 = vadd.xlane.f32.xlu0 %v34_v9 }
  0x9c   :  { %v33_v10 = vpop.xlane.xlu0 %32 }
  0x9d   :  { %68 = vrsqrt.f32 %v33_v10 }
  0xa0   :  { %v36_v11 = vpop.xlane.xlu0 %35 }
  0xa1   :  { %70 = vrsqrt.f32 %v36_v11 }
  0xaa   :  { %v69_v12 = vpop.eup %68 }
  0xab   :  { %v39_v13 = vmul.f32 %v69_v12, %v23_v0  ;;  %v40_v14 = vmul.f32 %v69_v12, %v24_v1 }
  0xad   :  { %43 = vst [vmem:[#allocation5] sm:$0xff] %v39_v13  ;;  %44 = vst [vmem:[#allocation5 + $0x8] sm:$0xff] %v40_v14 }
  0xae   :  { %v71_v15 = vpop.eup %70 }
  0xaf   :  { %v41_v16 = vmul.f32 %v71_v15, %v25_v2  ;;  %v42_v17 = vmul.f32 %v71_v15, %v26_v5 }
  0xb1   :  { %45 = vst [vmem:[#allocation5 + $0x10] sm:$0xff] %v41_v16  ;;  %46 = vst [vmem:[#allocation5 + $0x18] sm:$0xff] %v42_v17 }
  0xb2   :  { %103 = shalt.err (!%p100_p9)
}
  0xb3   :  { %58 = dma.vmem_to_hbm [thread:$0]  %s53_s13, 512, %s143_s1, [#allocation4], %s117_s9, %s117_s9, %s118_s10  }
  0xb4   :  { %114 = dma.done.wait [#allocation4], 512  }
  0xb5   :  { %115 = vsyncadd [#allocation4], 4294966784 }
  0xb6   :  { %62 = vsyncpa [#allocation3], 1 }
  0xb7   :  { %63 = vsyncpa [#allocation4], 1 }

</bundles_post_ra>
